<compile_context>
chip_gen: v7x
topology: tpu7x:2x2x1
jax: 0.10.0
libtpu: 0.0.40
codegen_flags: <defaults>
</compile_context>

<pallas_src>
import numpy as np
import jax
import jax.numpy as jnp
from jax import lax
from jax.experimental import pallas as pl
from jax.experimental.pallas import tpu as pltpu


def get_mask_19(in_channels, out_channels, kernel_size=3):
    mask = np.zeros((out_channels, in_channels, 3, 3), dtype=np.float32)
    for c in range(kernel_size):
        mask[:, :, c, c] = 1.0
    return mask


def conv19_kernel(x_ref, w_ref, o_ref):
    # x_ref: (N, Kpad, H*W)  diagonal im2col slab (Kpad = 3*Cin rounded to 8)
    # w_ref: (Cout, Kpad)    nonzero (diagonal) weight taps, zero-padded in K
    # o_ref: (N, Cout, H*W)  lane-dense output (H*W multiple of 128), NCHW order
    w = w_ref[...]
    n_batch = x_ref.shape[0]
    for n in range(n_batch):          # tiny static unroll (N=2), single grid step
        acc = jnp.dot(w, x_ref[n], preferred_element_type=jnp.float32)
        o_ref[n] = acc.astype(o_ref.dtype)


def conv_19_forward(x_nchw, weight_oihw, mask_oihw):
    """Equivalent of Conv_19.forward: conv2d(x, weight*mask, stride=1, pad=1, bias=None)."""
    w = weight_oihw * mask_oihw                       # (Cout, Cin, 3, 3)
    Cout, Cin = w.shape[0], w.shape[1]
    N, _, H, W = x_nchw.shape
    K = 3 * Cin
    Kpad = int(np.ceil(K / 8) * 8)                    # sublane-aligned contraction dim

    # Keep only the 3 diagonal taps:  w_flat[co, k*Cin + ci] = w[co, ci, k, k]
    w_diag = jnp.stack([w[:, :, k, k] for k in range(3)], axis=1)   # (Cout, 3, Cin)
    w_flat = w_diag.reshape(Cout, K)
    if Kpad > K:
        w_flat = jnp.pad(w_flat, ((0, 0), (0, Kpad - K)))

    # Diagonal im2col in NCHW order (kept in the wrapper at this toy size;
    # see TODO above for the fused production path):
    #   slab[n, k*Cin + ci, h*W + w] = x_padded[n, ci, h + k, w + k]
    xp = jnp.pad(x_nchw, ((0, 0), (0, 0), (1, 1), (1, 1)))
    slab = jnp.concatenate(
        [xp[:, :, k:k + H, k:k + W].reshape(N, Cin, H * W) for k in range(3)],
        axis=1)                                                     # (N, K, H*W)
    if Kpad > K:
        slab = jnp.pad(slab, ((0, 0), (0, Kpad - K), (0, 0)))       # zero taps -> no-op

    bytes_f32 = 4
    cost = pl.CostEstimate(
        flops=2 * N * Cout * K * H * W,
        transcendentals=0,
        bytes_accessed=(slab.size + w_flat.size + N * Cout * H * W) * bytes_f32)

    out = pl.pallas_call(
        conv19_kernel,
        out_shape=jax.ShapeDtypeStruct((N, Cout, H * W), x_nchw.dtype),
        in_specs=[
            pl.BlockSpec(memory_space=pltpu.MemorySpace.VMEM),
            pl.BlockSpec(memory_space=pltpu.MemorySpace.VMEM),
        ],
        out_specs=pl.BlockSpec(memory_space=pltpu.MemorySpace.VMEM),
        cost_estimate=cost,
    )(slab, w_flat)

    return out.reshape(N, Cout, H, W)                 # already NCHW


if __name__ == "__main__":
    in_channels, out_channels = 4, 8
    N, H, W = 2, 16, 16

    key = jax.random.PRNGKey(0)
    kx, kw = jax.random.split(key)

    x = jax.random.normal(kx, (N, in_channels, H, W), dtype=jnp.float32)
    # Deterministic synthetic weight (torch.Tensor in __init__ is uninitialized).
    weight = jax.random.normal(
        kw, (out_channels, in_channels, 3, 3), dtype=jnp.float32)
    mask = jnp.asarray(get_mask_19(in_channels, out_channels))
    # Mirrors __init__'s self.weight.data.mul_(self.mask.data); idempotent
    # since the mask is 0/1 (forward applies the mask again, as the module does).
    weight = weight * mask

    out = conv_19_forward(x, weight, mask)
    out = jax.block_until_ready(out)

    # Reference check with XLA's conv (same masked weight, stride 1, pad 1, no bias).
    ref = lax.conv_general_dilated(
        x, weight * mask, window_strides=(1, 1), padding=((1, 1), (1, 1)),
        dimension_numbers=("NCHW", "OIHW", "NCHW"))
    assert out.shape == (N, out_channels, H, W)
    assert jnp.allclose(out, ref, atol=1e-4, rtol=1e-4)

    print("KERNEL_OK")
</pallas_src>

<mosaic_0001>
module attributes {stable_mosaic.version = 11 : i64} {
  func.func @conv19_kernel(%arg0: memref<2x16x256xf32, #tpu.memory_space<vmem>>, %arg1: memref<8x16xf32, #tpu.memory_space<vmem>>, %arg2: memref<2x8x256xf32, #tpu.memory_space<vmem>>) attributes {dimension_semantics = [], scalar_prefetch = 0 : i64, scratch_operands = 0 : i64, tpu.core_type = #tpu.core_type<tc>} {
    %c0 = arith.constant 0 : index
    %c0_0 = arith.constant 0 : index
    %0 = vector.load %arg1[%c0, %c0_0] : memref<8x16xf32, #tpu.memory_space<vmem>>, vector<8x16xf32>
    %c0_1 = arith.constant 0 : index
    %c0_2 = arith.constant 0 : index
    %c0_3 = arith.constant 0 : index
    %1 = vector.load %arg0[%c0_1, %c0_2, %c0_3] : memref<2x16x256xf32, #tpu.memory_space<vmem>>, vector<1x16x256xf32>
    %2 = vector.shape_cast %1 : vector<1x16x256xf32> to vector<16x256xf32>
    %cst = arith.constant dense<0.000000e+00> : vector<8x256xf32>
    %3 = tpu.matmul %0, %2, %cst {dimension_numbers = #tpu.dot_dimension_numbers<[1], [0], [0], [1], [0, 0, 1, 1], [], []>} : vector<8x16xf32>, vector<16x256xf32>, vector<8x256xf32> -> vector<8x256xf32>
    %c0_4 = arith.constant 0 : index
    %c0_5 = arith.constant 0 : index
    %c0_6 = arith.constant 0 : index
    %4 = vector.load %arg2[%c0_4, %c0_5, %c0_6] : memref<2x8x256xf32, #tpu.memory_space<vmem>>, vector<1x8x256xf32>
    %5 = vector.shape_cast %4 : vector<1x8x256xf32> to vector<8x256xf32>
    %6 = vector.shape_cast %3 : vector<8x256xf32> to vector<1x8x256xf32>
    tpu.vector_store %arg2[%c0_4, %c0_5, %c0_6], %6 {strides = array<i32>} : memref<2x8x256xf32, #tpu.memory_space<vmem>>, vector<1x8x256xf32>,
    %c1 = arith.constant 1 : index
    %c0_7 = arith.constant 0 : index
    %c0_8 = arith.constant 0 : index
    %7 = vector.load %arg0[%c1, %c0_7, %c0_8] : memref<2x16x256xf32, #tpu.memory_space<vmem>>, vector<1x16x256xf32>
    %8 = vector.shape_cast %7 : vector<1x16x256xf32> to vector<16x256xf32>
    %cst_9 = arith.constant dense<0.000000e+00> : vector<8x256xf32>
    %9 = tpu.matmul %0, %8, %cst_9 {dimension_numbers = #tpu.dot_dimension_numbers<[1], [0], [0], [1], [0, 0, 1, 1], [], []>} : vector<8x16xf32>, vector<16x256xf32>, vector<8x256xf32> -> vector<8x256xf32>
    %c1_10 = arith.constant 1 : index
    %c0_11 = arith.constant 0 : index
    %c0_12 = arith.constant 0 : index
    %10 = vector.load %arg2[%c1_10, %c0_11, %c0_12] : memref<2x8x256xf32, #tpu.memory_space<vmem>>, vector<1x8x256xf32>
    %11 = vector.shape_cast %10 : vector<1x8x256xf32> to vector<8x256xf32>
    %12 = vector.shape_cast %9 : vector<8x256xf32> to vector<1x8x256xf32>
    tpu.vector_store %arg2[%c1_10, %c0_11, %c0_12], %12 {strides = array<i32>} : memref<2x8x256xf32, #tpu.memory_space<vmem>>, vector<1x8x256xf32>,
    return
  }
}

</mosaic_0001>

<bundles_post_ra>
// kernel: tpu_custom_call.1
= control target key start
LH: loop header
LB: loop body
LE: loop exit
PB: predicated region body
PF: predicated region fallthrough
CT: control target
= control target key end

     0   :  { %7 = vsyncpa [#allocation3], 0  ;;  %s368_s0 = inlined_call_operand.hbm [shape: f32[2,16,256], index: 0, kind: input, shape index: {}]   ;;  %s369_s1 = inlined_call_operand.hbm [shape: f32[8,16], index: 1, kind: input, shape index: {}]   ;;  %s370_s2 = inlined_call_operand.hbm [shape: f32[2,8,256], index: 2, kind: output, shape index: {}]  }
   0x1   :  { %8 = vsyncpa [#allocation6], 0 }
   0x2   :  { %9 = vsyncpa [#allocation4], 0  ;;  %s305_s9 = smov [#allocation2]   ;;  %s233_s13 = scalar_lea.hbm %s368_s0, 1024 }
   0x3   :  { %s15_s10 = sshll.u32 %s305_s9, 4  ;;  %p234_p0 = scmp.ne.s32.totalorder %s368_s0, %s233_s13  ;;  %s16_s10 = int_to_ptr.vmem [resolvable:$true] %s15_s10 }
   0x4   :  { %p237_p1 = scmp.lt.u32.totalorder %s233_s13, %s368_s0 }
   0x6   :  { %p239_p2 = pnand %p237_p1, %p234_p0 }
   0x8   :  { %242 = shalt.err (!%p239_p2)
}
   0x9   :  { %s243_s18 = scalar_lea.vmem %s16_s10, 1024  ;;  %p248_p4 = scmp.lt.s32.totalorder %s16_s10, %s16_s10 }
   0xa   :  { %p244_p3 = scmp.ne.s32.totalorder %s16_s10, %s243_s18  ;;  %p249_p5 = scmp.lt.s32.totalorder %s243_s18, %s243_s18 }
   0xc   :  { %p250_p6 = por %p249_p5, %p248_p4 }
   0xe   :  { %p251_p7 = pnand %p250_p6, %p244_p3 }
  0x10   :  { %254 = shalt.err (!%p251_p7)
}
  0x11   :  { %s306_s19 = smov 256   ;;  %s307_s20 = smov 16  }
  0x12   :  { %21 = dma.hbm_to_vmem [thread:$0]  %s368_s0, 1024, %s16_s10, [#allocation3], %s306_s19, %s306_s19, %s307_s20  }
  0x13   :  { %s308_s23 = smov [#allocation5]   ;;  %s255_s27 = scalar_lea.hbm %s369_s1, 128 }
  0x14   :  { %s28_s24 = sshll.u32 %s308_s23, 4  ;;  %p256_p8 = scmp.ne.s32.totalorder %s369_s1, %s255_s27  ;;  %s29_s24 = int_to_ptr.vmem [resolvable:$true] %s28_s24 }
  0x15   :  { %p259_p9 = scmp.lt.u32.totalorder %s255_s27, %s369_s1 }
  0x17   :  { %p261_p10 = pnand %p259_p9, %p256_p8 }
  0x19   :  { %264 = shalt.err (!%p261_p10)
}
  0x1a   :  { %s265_s4 = scalar_lea.vmem %s29_s24, 128  ;;  %p270_p12 = scmp.lt.s32.totalorder %s29_s24, %s29_s24 }
  0x1b   :  { %p266_p11 = scmp.ne.s32.totalorder %s29_s24, %s265_s4  ;;  %p271_p13 = scmp.lt.s32.totalorder %s265_s4, %s265_s4 }
  0x1d   :  { %p272_p0 = por %p271_p13, %p270_p12 }
  0x1f   :  { %p273_p1 = pnand %p272_p0, %p266_p11 }
  0x21   :  { %276 = shalt.err (!%p273_p1)
}
  0x22   :  { %31 = dma.hbm_to_vmem [thread:$0]  %s369_s1, 128, %s29_s24, [#allocation6]  }
  0x23   :  { %299 = dma.done.wait [#allocation3], 1024  }
  0x24   :  { %300 = vsyncadd [#allocation3], 4294966272 }
  0x25   :  { %301 = dma.done.wait [#allocation6], 128  }
  0x26   :  { %302 = vsyncadd [#allocation6], 4294967168  ;;  %v309_v0 = vmov 0.0   ;;  %v40_v1 = vld [vmem:[#allocation2 + $0x8] sm:$0xff]  ;;  %v42_v2 = vld [vmem:[#allocation2 + $0x18] sm:$0xff]  ;;  %vm43_vm0 = vcmask 130048  }
  0x27   :  { %111 = vmatprep.mubr.f32.mxu0 %v309_v0  ;;  %189 = vmatprep.mubr.f32.mxu1 %v309_v0  ;;  %v122_v3 = vld [vmem:[#allocation2 + $0x28] sm:$0xff]  ;;  %v219_v4 = vpack.c.bf16 %v42_v2, %v40_v1  ;;  %v124_v5 = vld [vmem:[#allocation2 + $0x38] sm:$0xff]  ;;  %v39_v6 = vld [vmem:[#allocation2] sm:$0xff]  ;;  %s310_s1 = smov [#allocation7]  }
  0x28   :  { %v41_v7 = vld [vmem:[#allocation2 + $0x10] sm:$0xff]  ;;  %v223_v8 = vpack.c.bf16 %v124_v5, %v122_v3  ;;  %v121_v10 = vld [vmem:[#allocation2 + $0x20] sm:$0xff]  ;;  %s204_s6 = sshll.u32 %s310_s1, 4  ;;  %s205_s6 = int_to_ptr.vmem [resolvable:$true] %s204_s6 }
  0x29   :  { %v221_v9 = vpack.c.bf16 %v41_v7, %v39_v6  ;;  %v123_v11 = vld [vmem:[#allocation2 + $0x30] sm:$0xff]  ;;  %220 = vmatprep.subr.bf16.mxu0 %v219_v4  ;;  %v38_v13 = vld [vmem:[#allocation5] sm:$0xff]  ;;  %s277_s7 = scalar_lea.vmem %s205_s6, 512  ;;  %p282_p3 = scmp.lt.s32.totalorder %s205_s6, %s205_s6 }
  0x2a   :  { %v225_v12 = vpack.c.bf16 %v123_v11, %v121_v10  ;;  %224 = vmatprep.subr.bf16.mxu1 %v223_v8  ;;  %p278_p2 = scmp.ne.s32.totalorder %s205_s6, %s277_s7  ;;  %p283_p4 = scmp.lt.s32.totalorder %s277_s7, %s277_s7 }
  0x2b   :  { %222 = vmatpush1.bf16.msra.mxu0 %v221_v9 }
  0x2c   :  { %226 = vmatpush1.bf16.msra.mxu1 %v225_v12  ;;  %p284_p5 = por %p283_p4, %p282_p3 }
  0x2e   :  { %217 = vmatmul.mubr.msk.f32.vlgmr.msra.gmra.mrb[0].mxu0 %vm43_vm0, %v38_v13  ;;  %p285_p6 = pnand %p284_p5, %p278_p2 }
  0x2f   :  { %218 = vmatmul.mubr.msk.f32.vlgmr.msra.gmra.mrb[0].mxu1 %vm43_vm0, %v38_v13 }
 0x101   :  { %v113_v14 = vpop.f32.mrb[0].mxu0 }
 0x102   :  { %118 = vst [vmem:[#allocation7] sm:$0xff] %v113_v14  ;;  %v191_v15 = vpop.f32.mrb[0].mxu1  ;;  %v115_v16 = vpop.f32.mrb[1].mxu0 }
 0x103   :  { %197 = vst [vmem:[#allocation7 + $0x10] sm:$0xff] %v191_v15  ;;  %119 = vst [vmem:[#allocation7 + $0x8] sm:$0xff] %v115_v16  ;;  %v193_v17 = vpop.f32.mrb[1].mxu1 }
 0x104   :  { %198 = vst [vmem:[#allocation7 + $0x18] sm:$0xff] %v193_v17 }
 0x105   :  { %288 = shalt.err (!%p285_p6)
}
 0x106   :  { %s289_s10 = scalar_lea.hbm %s370_s2, 512 }
 0x107   :  { %p290_p7 = scmp.ne.s32.totalorder %s370_s2, %s289_s10  ;;  %p293_p8 = scmp.lt.u32.totalorder %s289_s10, %s370_s2 }
 0x109   :  { %p295_p9 = pnand %p293_p8, %p290_p7 }
 0x10b   :  { %298 = shalt.err (!%p295_p9)
}
 0x10c   :  { %210 = dma.vmem_to_hbm [thread:$0]  %s205_s6, 512, %s370_s2, [#allocation4], %s306_s19, %s306_s19, %s307_s20  }
 0x10d   :  { %303 = dma.done.wait [#allocation4], 512  }
 0x10e   :  { %304 = vsyncadd [#allocation4], 4294966784 }
 0x10f   :  { %214 = vsyncpa [#allocation3], 1 }
 0x110   :  { %215 = vsyncpa [#allocation6], 1 }
 0x111   :  { %216 = vsyncpa [#allocation4], 1 }

</bundles_post_ra>
